<compile_context>
chip_gen: v6e
topology: v6e:2x2x1
jax: 0.10.0
libtpu: 0.0.40
codegen_flags: <defaults>
</compile_context>

<pallas_src>
import functools

import jax
import jax.numpy as jnp
from jax.experimental import pallas as pl
from jax.experimental.pallas import tpu as pltpu


def qmix_kernel(q_ref, s_ref,
                wcat_ref, bcat_ref,   # fused hypernet: (N*H+3H, S) bf16, (N*H+3H, 1) f32
                wb2b_ref, bb2b_ref,   # hyper_b2[2]: (H, 1) f32, (1, 1) f32
                out_ref,
                *, n_agents, hidden):
    f32 = jnp.float32
    nh = n_agents * hidden

    s = s_ref[...]                       # (S,  TB) bf16   batch on lanes
    q = q_ref[...].astype(f32)           # (N,  TB) f32

    # One fused lane-dense hyper-network matmul on the MXU (f32 accumulation):
    # hcat^T = Wcat^T @ s^T + bcat^T  -> (N*H + 3H, TB)
    hcat = jnp.dot(wcat_ref[...], s, preferred_element_type=f32) + bcat_ref[...]

    # Head slices (sublane offsets 0 / nh / nh+H / nh+2H, all multiples of 8
    # for H multiple of 8 -> no relayout copies).
    w1 = jnp.abs(hcat[:nh, :])                                # (N*H, TB)
    b1 = hcat[nh:nh + hidden, :]                              # (H,   TB)
    w2 = jnp.abs(hcat[nh + hidden:nh + 2 * hidden, :])        # (H,   TB)
    h2 = jnp.maximum(hcat[nh + 2 * hidden:nh + 3 * hidden, :], 0.0)  # ReLU, (H, TB)

    # q_hidden^T = ELU( sum_n q[n, :] * w1[n*H:(n+1)*H, :] + b1 )
    # statically unrolled N-term slice-FMA on the VPU (sublane-aligned slices).
    acc = b1
    for n in range(n_agents):
        acc = acc + q[n:n + 1, :] * w1[n * hidden:(n + 1) * hidden, :]
    q_hidden = jnp.where(acc > 0.0, acc,
                         jnp.exp(jnp.minimum(acc, 0.0)) - 1.0)        # ELU(alpha=1), f32

    # q_joint = sum_h q_hidden*w2  +  (sum_h relu(h2)*wb2b + bb2b)
    # Both H->1 contractions share one sublane reduction; the result is a
    # lane-dense (1, TB) row.
    red = jnp.sum(q_hidden * w2 + h2 * wb2b_ref[...], axis=0, keepdims=True)
    out_ref[...] = red + bb2b_ref[...]                                # (1, TB)


def prepare_mixing_params(params, *, compute_dtype=jnp.bfloat16):
    """Hoisted (once-per-parameter-update) weight preparation for the kernel."""
    w_cat_t = jnp.concatenate(
        [params["w1h"], params["wb1"], params["w2h"], params["wb2a"]],
        axis=1).T.astype(compute_dtype)                     # (N*H + 3H, S)
    b_cat_t = jnp.concatenate(
        [params["b1h"], params["bb1"], params["b2h"], params["bb2a"]],
        axis=1).T.astype(jnp.float32)                       # (N*H + 3H, 1)
    wb2b = params["wb2b"].astype(jnp.float32)               # (H, 1)
    bb2b = params["bb2b"].astype(jnp.float32)               # (1, 1)
    return dict(w_cat_t=w_cat_t, b_cat_t=b_cat_t, wb2b=wb2b, bb2b=bb2b)


def qmix_mixing_forward(q, s, prep, *, batch_size, n_agents, state_dim,
                        hidden, tb=512, compute_dtype=jnp.bfloat16):
    """q: (..., N); s: (..., state_dim). Returns (batch_size, -1, 1)."""
    assert tb % 128 == 0, "tb is the lane (batch) tile; must be a multiple of 128"

    # Transposed (batch-on-lanes) layout: cheap wrapper-side layout plumbing
    # that makes the kernel's output store lane-dense.
    qt = q.reshape(-1, n_agents).T.astype(compute_dtype)    # (N, B)
    st = s.reshape(-1, state_dim).T.astype(compute_dtype)   # (S, B)
    B = qt.shape[1]

    # Natural tiling: one tile whenever the lane-aligned batch fits (no forced
    # 2-way split; padded lanes cost nothing below one 128-lane vreg anyway).
    b_al = ((B + 127) // 128) * 128
    if b_al <= tb:
        tb_eff, n_tiles = b_al, 1
    else:
        tb_eff, n_tiles = tb, pl.cdiv(B, tb)
    b_pad = n_tiles * tb_eff
    if b_pad != B:
        # Padded columns see bias-only activations (finite) and are sliced off.
        qt = jnp.pad(qt, ((0, 0), (0, b_pad - B)))
        st = jnp.pad(st, ((0, 0), (0, b_pad - B)))

    const = lambda arr: pl.BlockSpec(arr.shape, lambda i: (0, 0))
    kernel = functools.partial(qmix_kernel, n_agents=n_agents, hidden=hidden)

    out = pl.pallas_call(
        kernel,
        out_shape=jax.ShapeDtypeStruct((1, b_pad), jnp.float32),
        grid_spec=pltpu.PrefetchScalarGridSpec(
            num_scalar_prefetch=0,
            grid=(n_tiles,),
            in_specs=[
                pl.BlockSpec((n_agents, tb_eff), lambda i: (0, i)),
                pl.BlockSpec((state_dim, tb_eff), lambda i: (0, i)),
                const(prep["w_cat_t"]), const(prep["b_cat_t"]),
                const(prep["wb2b"]), const(prep["bb2b"]),
            ],
            out_specs=pl.BlockSpec((1, tb_eff), lambda i: (0, i)),
        ),
        compiler_params=pltpu.CompilerParams(
            dimension_semantics=("parallel",),
            vmem_limit_bytes=32 * 1024 * 1024),
    )(qt, st, prep["w_cat_t"], prep["b_cat_t"], prep["wb2b"], prep["bb2b"])

    # q_joint = q_joint.view(batch_size, -1, 1)
    return out[0, :B].reshape(batch_size, -1, 1)


def init_params(key, *, n_agents, state_dim, hidden):
    """PyTorch nn.Linear-style init (uniform +/- 1/sqrt(fan_in)); weights are
       stored (in_features, out_features) so x @ W matches torch Linear."""
    def linear(k, fan_in, fan_out):
        kw, kb = jax.random.split(k)
        bound = 1.0 / jnp.sqrt(float(fan_in))
        w = jax.random.uniform(kw, (fan_in, fan_out), jnp.float32, -bound, bound)
        b = jax.random.uniform(kb, (1, fan_out), jnp.float32, -bound, bound)
        return w, b

    ks = jax.random.split(key, 5)
    w1h, b1h = linear(ks[0], state_dim, n_agents * hidden)    # hyper_w1
    w2h, b2h = linear(ks[1], state_dim, hidden)                # hyper_w2
    wb1, bb1 = linear(ks[2], state_dim, hidden)                # hyper_b1
    wb2a, bb2a = linear(ks[3], state_dim, hidden)              # hyper_b2[0]
    wb2b, bb2b = linear(ks[4], hidden, 1)                      # hyper_b2[2]
    return dict(w1h=w1h, b1h=b1h, w2h=w2h, b2h=b2h, wb1=wb1, bb1=bb1,
                wb2a=wb2a, bb2a=bb2a, wb2b=wb2b, bb2b=bb2b)


def qmix_reference(q, s, p, *, batch_size, n_agents, state_dim, hidden,
                   compute_dtype=jnp.bfloat16):
    """Pure-JAX reference mirroring the PyTorch forward (inputs/weights cast to
       the same compute dtype as the kernel; accumulation in f32)."""
    f32 = jnp.float32
    qf = q.reshape(-1, 1, n_agents).astype(compute_dtype).astype(f32)
    sf = s.reshape(-1, state_dim).astype(compute_dtype)
    d = lambda a, w: jnp.dot(a, w.astype(compute_dtype), preferred_element_type=f32)

    w1 = jnp.abs(d(sf, p["w1h"]) + p["b1h"]).reshape(-1, n_agents, hidden)
    b1 = (d(sf, p["wb1"]) + p["bb1"]).reshape(-1, 1, hidden)
    q_hidden = jax.nn.elu(jnp.einsum("bin,bnh->bih", qf, w1) + b1)
    w2 = jnp.abs(d(sf, p["w2h"]) + p["b2h"]).reshape(-1, hidden, 1)
    b2_h = jax.nn.relu(d(sf, p["wb2a"]) + p["bb2a"])
    b2 = (b2_h @ p["wb2b"] + p["bb2b"]).reshape(-1, 1, 1)
    q_joint = jnp.einsum("bih,bho->bio", q_hidden, w2) + b2
    return q_joint.reshape(batch_size, -1, 1)


if __name__ == "__main__":
    # args: n_predator=4, batch_size=8, state_dim=16, mixing_hidden_dim=32
    N, BATCH, S, H = 4, 8, 16, 32
    T = 4                               # time steps folded into the leading dim

    key = jax.random.PRNGKey(0)
    kp, kq, ks = jax.random.split(key, 3)
    params = init_params(kp, n_agents=N, state_dim=S, hidden=H)
    prep = prepare_mixing_params(params)     # hoisted out of the forward path

    q_in = jax.random.normal(kq, (BATCH, T, N), jnp.float32)
    s_in = jax.random.normal(ks, (BATCH, T, S), jnp.float32)

    out = qmix_mixing_forward(q_in, s_in, prep, batch_size=BATCH,
                              n_agents=N, state_dim=S, hidden=H)
    out = jax.block_until_ready(out)

    ref = qmix_reference(q_in, s_in, params, batch_size=BATCH,
                         n_agents=N, state_dim=S, hidden=H)
    assert out.shape == (BATCH, T, 1)
    assert jnp.allclose(out, ref, atol=1e-3, rtol=1e-3), \
        float(jnp.max(jnp.abs(out - ref)))
    print("KERNEL_OK")
</pallas_src>

<mosaic_0001>
module attributes {stable_mosaic.version = 11 : i64} {
  func.func @qmix_kernel(%arg0: i32, %arg1: memref<4x128xbf16, #tpu.memory_space<vmem>>, %arg2: memref<16x128xbf16, #tpu.memory_space<vmem>>, %arg3: memref<224x16xbf16, #tpu.memory_space<vmem>>, %arg4: memref<224x1xf32, #tpu.memory_space<vmem>>, %arg5: memref<32x1xf32, #tpu.memory_space<vmem>>, %arg6: memref<1x1xf32, #tpu.memory_space<vmem>>, %arg7: memref<1x128xf32, #tpu.memory_space<vmem>>) attributes {dimension_semantics = [#tpu.dimension_semantics<parallel>], iteration_bounds = array<i64: 1>, scalar_prefetch = 0 : i64, scratch_operands = 0 : i64, tpu.core_type = #tpu.core_type<tc>, window_params = [{transform_indices = @transform_0, window_bounds = array<i64: 4, 128>}, {transform_indices = @transform_1, window_bounds = array<i64: 16, 128>}, {pipeline_mode = #tpu.pipeline_mode<synchronous>, transform_indices = @transform_2, window_bounds = array<i64: 224, 16>}, {pipeline_mode = #tpu.pipeline_mode<synchronous>, transform_indices = @transform_3, window_bounds = array<i64: 224, 1>}, {pipeline_mode = #tpu.pipeline_mode<synchronous>, transform_indices = @transform_4, window_bounds = array<i64: 32, 1>}, {pipeline_mode = #tpu.pipeline_mode<synchronous>, transform_indices = @transform_5, window_bounds = array<i64: 1, 1>}, {transform_indices = @transform_6, window_bounds = array<i64: 1, 128>}]} {
    %c0 = arith.constant 0 : index
    %c0_0 = arith.constant 0 : index
    %0 = vector.load %arg2[%c0, %c0_0] : memref<16x128xbf16, #tpu.memory_space<vmem>>, vector<16x128xbf16>
    %c0_1 = arith.constant 0 : index
    %c0_2 = arith.constant 0 : index
    %1 = vector.load %arg1[%c0_1, %c0_2] : memref<4x128xbf16, #tpu.memory_space<vmem>>, vector<4x128xbf16>
    %2 = arith.extf %1 : vector<4x128xbf16> to vector<4x128xf32>
    %c0_3 = arith.constant 0 : index
    %c0_4 = arith.constant 0 : index
    %3 = vector.load %arg3[%c0_3, %c0_4] : memref<224x16xbf16, #tpu.memory_space<vmem>>, vector<224x16xbf16>
    %cst = arith.constant dense<0.000000e+00> : vector<224x128xf32>
    %4 = tpu.matmul %3, %0, %cst {dimension_numbers = #tpu.dot_dimension_numbers<[1], [0], [0], [1], [0, 0, 1, 1], [], []>} : vector<224x16xbf16>, vector<16x128xbf16>, vector<224x128xf32> -> vector<224x128xf32>
    %c0_5 = arith.constant 0 : index
    %c0_6 = arith.constant 0 : index
    %5 = vector.load %arg4[%c0_5, %c0_6] : memref<224x1xf32, #tpu.memory_space<vmem>>, vector<224x1xf32>
    %6 = vector.broadcast %5 : vector<224x1xf32> to vector<224x128xf32>
    %7 = arith.addf %4, %6 : vector<224x128xf32>
    %8 = vector.extract_strided_slice %7 {offsets = [0, 0], sizes = [128, 128], strides = [1, 1]} : vector<224x128xf32> to vector<128x128xf32>
    %9 = math.absf %8 : vector<128x128xf32>
    %10 = vector.extract_strided_slice %7 {offsets = [128, 0], sizes = [32, 128], strides = [1, 1]} : vector<224x128xf32> to vector<32x128xf32>
    %11 = vector.extract_strided_slice %7 {offsets = [160, 0], sizes = [32, 128], strides = [1, 1]} : vector<224x128xf32> to vector<32x128xf32>
    %12 = math.absf %11 : vector<32x128xf32>
    %13 = vector.extract_strided_slice %7 {offsets = [192, 0], sizes = [32, 128], strides = [1, 1]} : vector<224x128xf32> to vector<32x128xf32>
    %cst_7 = arith.constant 0.000000e+00 : f32
    %14 = vector.broadcast %cst_7 : f32 to vector<32x128xf32>
    %15 = arith.maximumf %13, %14 : vector<32x128xf32>
    %16 = vector.extract_strided_slice %2 {offsets = [0, 0], sizes = [1, 128], strides = [1, 1]} : vector<4x128xf32> to vector<1x128xf32>
    %17 = vector.extract_strided_slice %9 {offsets = [0, 0], sizes = [32, 128], strides = [1, 1]} : vector<128x128xf32> to vector<32x128xf32>
    %18 = vector.broadcast %16 : vector<1x128xf32> to vector<32x128xf32>
    %19 = arith.mulf %18, %17 : vector<32x128xf32>
    %20 = arith.addf %10, %19 : vector<32x128xf32>
    %21 = vector.extract_strided_slice %2 {offsets = [1, 0], sizes = [1, 128], strides = [1, 1]} : vector<4x128xf32> to vector<1x128xf32>
    %22 = vector.extract_strided_slice %9 {offsets = [32, 0], sizes = [32, 128], strides = [1, 1]} : vector<128x128xf32> to vector<32x128xf32>
    %23 = vector.broadcast %21 : vector<1x128xf32> to vector<32x128xf32>
    %24 = arith.mulf %23, %22 : vector<32x128xf32>
    %25 = arith.addf %20, %24 : vector<32x128xf32>
    %26 = vector.extract_strided_slice %2 {offsets = [2, 0], sizes = [1, 128], strides = [1, 1]} : vector<4x128xf32> to vector<1x128xf32>
    %27 = vector.extract_strided_slice %9 {offsets = [64, 0], sizes = [32, 128], strides = [1, 1]} : vector<128x128xf32> to vector<32x128xf32>
    %28 = vector.broadcast %26 : vector<1x128xf32> to vector<32x128xf32>
    %29 = arith.mulf %28, %27 : vector<32x128xf32>
    %30 = arith.addf %25, %29 : vector<32x128xf32>
    %31 = vector.extract_strided_slice %2 {offsets = [3, 0], sizes = [1, 128], strides = [1, 1]} : vector<4x128xf32> to vector<1x128xf32>
    %32 = vector.extract_strided_slice %9 {offsets = [96, 0], sizes = [32, 128], strides = [1, 1]} : vector<128x128xf32> to vector<32x128xf32>
    %33 = vector.broadcast %31 : vector<1x128xf32> to vector<32x128xf32>
    %34 = arith.mulf %33, %32 : vector<32x128xf32>
    %35 = arith.addf %30, %34 : vector<32x128xf32>
    %cst_8 = arith.constant 0.000000e+00 : f32
    %36 = vector.broadcast %cst_8 : f32 to vector<32x128xf32>
    %37 = arith.cmpf ogt, %35, %36 : vector<32x128xf32>
    %cst_9 = arith.constant 0.000000e+00 : f32
    %38 = vector.broadcast %cst_9 : f32 to vector<32x128xf32>
    %39 = arith.minimumf %35, %38 : vector<32x128xf32>
    %40 = math.exp %39 : vector<32x128xf32>
    %cst_10 = arith.constant 1.000000e+00 : f32
    %41 = vector.broadcast %cst_10 : f32 to vector<32x128xf32>
    %42 = arith.subf %40, %41 : vector<32x128xf32>
    %43 = arith.select %37, %35, %42 : vector<32x128xi1>, vector<32x128xf32>
    %44 = arith.mulf %43, %12 : vector<32x128xf32>
    %c0_11 = arith.constant 0 : index
    %c0_12 = arith.constant 0 : index
    %45 = vector.load %arg5[%c0_11, %c0_12] : memref<32x1xf32, #tpu.memory_space<vmem>>, vector<32x1xf32>
    %46 = vector.broadcast %45 : vector<32x1xf32> to vector<32x128xf32>
    %47 = arith.mulf %15, %46 : vector<32x128xf32>
    %48 = arith.addf %44, %47 : vector<32x128xf32>
    %cst_13 = arith.constant dense<0.000000e+00> : vector<128xf32>
    %49 = vector.multi_reduction <add>, %48, %cst_13 [0] : vector<32x128xf32> to vector<128xf32>
    %50 = vector.shape_cast %49 : vector<128xf32> to vector<1x128xf32>
    %c0_14 = arith.constant 0 : index
    %c0_15 = arith.constant 0 : index
    %51 = vector.load %arg6[%c0_14, %c0_15] : memref<1x1xf32, #tpu.memory_space<vmem>>, vector<1x1xf32>
    %52 = vector.broadcast %51 : vector<1x1xf32> to vector<1x128xf32>
    %53 = arith.addf %50, %52 : vector<1x128xf32>
    %c0_16 = arith.constant 0 : index
    %c0_17 = arith.constant 0 : index
    %54 = vector.load %arg7[%c0_16, %c0_17] : memref<1x128xf32, #tpu.memory_space<vmem>>, vector<1x128xf32>
    tpu.vector_store %arg7[%c0_16, %c0_17], %53 {strides = array<i32>} : memref<1x128xf32, #tpu.memory_space<vmem>>, vector<1x128xf32>,
    return
  }
  func.func @transform_0(%arg0: i32) -> (i32, i32) {
    %c0_i32 = arith.constant 0 : i32
    %c0_i32_0 = arith.constant 0 : i32
    return %c0_i32, %arg0 : i32, i32
  }
  func.func @transform_1(%arg0: i32) -> (i32, i32) {
    %c0_i32 = arith.constant 0 : i32
    %c0_i32_0 = arith.constant 0 : i32
    return %c0_i32, %arg0 : i32, i32
  }
  func.func @transform_2(%arg0: i32) -> (i32, i32) {
    %c0_i32 = arith.constant 0 : i32
    %c0_i32_0 = arith.constant 0 : i32
    %c0_i32_1 = arith.constant 0 : i32
    return %c0_i32, %c0_i32_0 : i32, i32
  }
  func.func @transform_3(%arg0: i32) -> (i32, i32) {
    %c0_i32 = arith.constant 0 : i32
    %c0_i32_0 = arith.constant 0 : i32
    %c0_i32_1 = arith.constant 0 : i32
    return %c0_i32, %c0_i32_0 : i32, i32
  }
  func.func @transform_4(%arg0: i32) -> (i32, i32) {
    %c0_i32 = arith.constant 0 : i32
    %c0_i32_0 = arith.constant 0 : i32
    %c0_i32_1 = arith.constant 0 : i32
    return %c0_i32, %c0_i32_0 : i32, i32
  }
  func.func @transform_5(%arg0: i32) -> (i32, i32) {
    %c0_i32 = arith.constant 0 : i32
    %c0_i32_0 = arith.constant 0 : i32
    %c0_i32_1 = arith.constant 0 : i32
    return %c0_i32, %c0_i32_0 : i32, i32
  }
  func.func @transform_6(%arg0: i32) -> (i32, i32) {
    %c0_i32 = arith.constant 0 : i32
    %c0_i32_0 = arith.constant 0 : i32
    return %c0_i32, %arg0 : i32, i32
  }
}

</mosaic_0001>

<bundles_post_ra>
// kernel: tpu_custom_call.1
= control target key start
LH: loop header
LB: loop body
LE: loop exit
PB: predicated region body
PF: predicated region fallthrough
CT: control target
= control target key end

     0   :  { %s1021_s0 = inlined_call_operand.vmem [shape: bf16[4,128], index: 0, kind: input, shape index: {}]   ;;  %s1022_s1 = inlined_call_operand.vmem [shape: bf16[16,128], index: 1, kind: input, shape index: {}]   ;;  %s1023_s2 = inlined_call_operand.vmem [shape: bf16[224,16], index: 2, kind: input, shape index: {}]   ;;  %s1024_s3 = inlined_call_operand.vmem [shape: f32[224,1], index: 3, kind: input, shape index: {}]   ;;  %s1025_s4 = inlined_call_operand.vmem [shape: f32[32,1], index: 4, kind: input, shape index: {}]   ;;  %s1026_s5 = inlined_call_operand.<no memory space> [shape: f32[1,1], index: 5, kind: input, shape index: {}]   ;;  %s1027_s6 = inlined_call_operand.hbm [shape: f32[1,128], index: 6, kind: output, shape index: {}]  }
   0x1   :  { %v11_v0 = vstv %s1026_s5 }
   0x2   :  { %12 = vst [vmem:[#allocation2] sm:$0x1] %v11_v0 }
   0x3   :  { %v742_v1 = vld [vmem:[%s1022_s1] sm:$0xff]   ;;  %vm303_vm0 = vcmask 130048   ;;  %v745_v4 = vld [vmem:[%s1023_s2 + $0x8] sm:$0xff]   ;;  %v787_v6 = vmov 0   ;;  %v61_v8 = vld [vmem:[%s1024_s3 + $0x10] sm:$0xff] }
   0x4   :  { %v743_v2 = vld [vmem:[%s1023_s2] sm:$0xff]   ;;  %706 = vmatprep.subr.bf16.mxu0 %v742_v1  ;;  %736 = vmatprep.subr.bf16.mxu1 %v742_v1  ;;  %v746_v5 = vld [vmem:[%s1023_s2 + $0x48] sm:$0xff]   ;;  %v747_v9 = vld [vmem:[%s1023_s2 + $0x10] sm:$0xff]  }
   0x5   :  { %v744_v3 = vld [vmem:[%s1023_s2 + $0x40] sm:$0xff]   ;;  %707 = vmatpush3.bf16.msra.mxu0 %v742_v1  ;;  %737 = vmatpush3.bf16.msra.mxu1 %v742_v1  ;;  %v748_v10 = vld [vmem:[%s1023_s2 + $0x50] sm:$0xff]   ;;  %v60_v11 = vld [vmem:[%s1024_s3 + $0x8] sm:$0xff] }
   0x6   :  { %708 = vmatprep.mubr.msk.bf16.mxu0 %vm303_vm0, %v743_v2  ;;  %724 = vmatprep.mubr.msk.bf16.mxu1 %vm303_vm0, %v744_v3  ;;  %v59_v7 = vld [vmem:[%s1024_s3] sm:$0xff]  ;;  %v749_v12 = vld [vmem:[%s1023_s2 + $0x18] sm:$0xff]   ;;  %v64_v14 = vld [vmem:[%s1024_s3 + $0x28] sm:$0xff] }
   0x7   :  { %740 = vset.pattern.permute.xlu0 %v787_v6  ;;  %741 = vset.pattern.permute.xlu1 %v787_v6  ;;  %v750_v13 = vld [vmem:[%s1023_s2 + $0x58] sm:$0xff]   ;;  %v63_v15 = vld [vmem:[%s1024_s3 + $0x20] sm:$0xff]  ;;  %v65_v19 = vld [vmem:[%s1024_s3 + $0x30] sm:$0xff] }
   0x8   :  { %709 = vmatmul.mubr.msk.bf16.vlgmr.msra.gmra.mxu0 %vm303_vm0, %v745_v4  ;;  %725 = vmatmul.mubr.msk.bf16.vlgmr.msra.gmra.mxu1 %vm303_vm0, %v746_v5  ;;  %v62_v16 = vld [vmem:[%s1024_s3 + $0x18] sm:$0xff]  ;;  %v751_v17 = vld [vmem:[%s1023_s2 + $0x20] sm:$0xff]   ;;  %v753_v21 = vld [vmem:[%s1023_s2 + $0x28] sm:$0xff]  }
   0x9   :  { %89 = vperm.xlu0 %740, %v59_v7   ;;  %99 = vperm.xlu1 %741, %v61_v8   ;;  %v752_v18 = vld [vmem:[%s1023_s2 + $0x60] sm:$0xff]   ;;  %v754_v22 = vld [vmem:[%s1023_s2 + $0x68] sm:$0xff]   ;;  %v755_v25 = vld [vmem:[%s1023_s2 + $0x30] sm:$0xff]  }
   0xa   :  { %712 = vmatprep.mubr.msk.bf16.mxu0 %vm303_vm0, %v747_v9  ;;  %728 = vmatprep.mubr.msk.bf16.mxu1 %vm303_vm0, %v748_v10  ;;  %v67_v20 = vld [vmem:[%s1024_s3 + $0x40] sm:$0xff]  ;;  %v68_v23 = vld [vmem:[%s1024_s3 + $0x48] sm:$0xff]  ;;  %v66_v27 = vld [vmem:[%s1024_s3 + $0x38] sm:$0xff] }
   0xb   :  { %v75_v24 = vld [vmem:[%s1024_s3 + $0x80] sm:$0xff]  ;;  %v76_v26 = vld [vmem:[%s1024_s3 + $0x88] sm:$0xff]  ;;  %v756_v28 = vld [vmem:[%s1023_s2 + $0x38] sm:$0xff]  }
   0xd   :  { %94 = vperm.xlu0 %740, %v60_v11   ;;  %109 = vperm.xlu1 %741, %v63_v15  }
  0x10   :  { %713 = vmatmul.mubr.msk.bf16.gmra.mxu0 %vm303_vm0, %v749_v12  ;;  %729 = vmatmul.mubr.msk.bf16.gmra.mxu1 %vm303_vm0, %v750_v13 }
  0x11   :  { %114 = vperm.xlu0 %740, %v64_v14   ;;  %104 = vperm.xlu1 %741, %v62_v16  }
  0x12   :  { %716 = vmatprep.mubr.msk.bf16.mxu0 %vm303_vm0, %v751_v17  ;;  %732 = vmatprep.mubr.msk.bf16.mxu1 %vm303_vm0, %v752_v18 }
  0x15   :  { %119 = vperm.xlu0 %740, %v65_v19   ;;  %129 = vperm.xlu1 %741, %v67_v20  }
  0x18   :  { %717 = vmatmul.mubr.msk.bf16.gmra.mxu0 %vm303_vm0, %v753_v21  ;;  %733 = vmatmul.mubr.msk.bf16.gmra.mxu1 %vm303_vm0, %v754_v22 }
  0x19   :  { %134 = vperm.xlu0 %740, %v68_v23   ;;  %169 = vperm.xlu1 %741, %v75_v24  }
  0x1a   :  { %720 = vmatprep.mubr.msk.bf16.mxu0 %vm303_vm0, %v755_v25 }
  0x1b   :  { %13 = vsyncpa [#allocation4], 0  ;;  %v69_v29 = vld [vmem:[%s1024_s3 + $0x50] sm:$0xff]  ;;  %v71_v30 = vld [vmem:[%s1024_s3 + $0x60] sm:$0xff]  ;;  %v515_v2 = vlaneseq }
  0x1c   :  { %v72_v31 = vld [vmem:[%s1024_s3 + $0x68] sm:$0xff]  ;;  %v77_v32 = vld [vmem:[%s1024_s3 + $0x90] sm:$0xff]  ;;  %v70_v33 = vld [vmem:[%s1024_s3 + $0x58] sm:$0xff] }
  0x1d   :  { %174 = vperm.xlu0 %740, %v76_v26   ;;  %124 = vperm.xlu1 %741, %v66_v27   ;;  %v73_v34 = vld [vmem:[%s1024_s3 + $0x70] sm:$0xff]  ;;  %v78_v35 = vld [vmem:[%s1024_s3 + $0x98] sm:$0xff]  ;;  %v79_v37 = vld [vmem:[%s1024_s3 + $0xa0] sm:$0xff]  ;;  %v991_v8 = vshrl.u32 %v515_v2, 7 }
  0x1e   :  { %v74_v36 = vld [vmem:[%s1024_s3 + $0x78] sm:$0xff]  ;;  %v80_v38 = vld [vmem:[%s1024_s3 + $0xa8] sm:$0xff]  ;;  %v83_v39 = vld [vmem:[%s1024_s3 + $0xc0] sm:$0xff] }
  0x1f   :  { %v84_v40 = vld [vmem:[%s1024_s3 + $0xc8] sm:$0xff]  ;;  %v81_v41 = vld [vmem:[%s1024_s3 + $0xb0] sm:$0xff]  ;;  %v82_v43 = vld [vmem:[%s1024_s3 + $0xb8] sm:$0xff]  ;;  %v517_v15 = vsub.s32 0, %v991_v8  ;;  %v529_v19 = vsub.s32 1, %v991_v8  ;;  %v541_v27 = vsub.s32 2, %v991_v8 }
  0x20   :  { %721 = vmatmul.mubr.msk.bf16.gmra.mxu0 %vm303_vm0, %v756_v28  ;;  %v85_v42 = vld [vmem:[%s1024_s3 + $0xd0] sm:$0xff]  ;;  %v86_v44 = vld [vmem:[%s1024_s3 + $0xd8] sm:$0xff]  ;;  %v591_v45 = vld [vmem:[%s1025_s4] sm:$0xff] }
  0x21   :  { %139 = vperm.xlu0 %740, %v69_v29   ;;  %149 = vperm.xlu1 %741, %v71_v30   ;;  %v592_v46 = vld [vmem:[%s1025_s4 + $0x8] sm:$0xff]  ;;  %v593_v47 = vld [vmem:[%s1025_s4 + $0x10] sm:$0xff]  ;;  %v594_v48 = vld [vmem:[%s1025_s4 + $0x18] sm:$0xff] }
  0x22   :  { %v632_v49 = vld [vmem:[#allocation2] sm:$0x1] }
  0x23   :  { %v29_v5 = vld [vmem:[%s1021_s0] sm:$0x3]  ;;  %s788_s0 = smov [#allocation3]  }
  0x24   :  { %v30_v12 = vunpack.c.l.bf16 %v29_v5  ;;  %s650_s11 = sshll.u32 %s788_s0, 4  ;;  %s651_s11 = int_to_ptr.vmem [resolvable:$true] %s650_s11 }
  0x25   :  { %154 = vperm.xlu0 %740, %v72_v31   ;;  %179 = vperm.xlu1 %741, %v77_v32   ;;  %s765_s12 = scalar_lea.vmem %s651_s11, 16  ;;  %s769_s13 = scalar_lea.vmem %s651_s11, 32 }
  0x26   :  { %v518_v22 = vrot.slane %v30_v12, %v517_v15  ;;  %p766_p0 = scmp.ne.s32.totalorder %s651_s11, %s765_s12  ;;  %p770_p1 = scmp.lt.s32.totalorder %s651_s11, %s651_s11 }
  0x27   :  { %p771_p2 = scmp.lt.s32.totalorder %s769_s13, %s765_s12 }
  0x29   :  { %144 = vperm.xlu0 %740, %v70_v33   ;;  %159 = vperm.xlu1 %741, %v73_v34   ;;  %v530_v33 = vrot.slane %v30_v12, %v529_v19  ;;  %p772_p3 = por %p771_p2, %p770_p1 }
  0x2b   :  { %p773_p4 = pnand %p772_p3, %p766_p0 }
  0x2d   :  { %184 = vperm.xlu0 %740, %v78_v35   ;;  %164 = vperm.xlu1 %741, %v74_v36  }
  0x31   :  { %189 = vperm.xlu0 %740, %v79_v37   ;;  %194 = vperm.xlu1 %741, %v80_v38  }
  0x35   :  { %209 = vperm.xlu0 %740, %v83_v39   ;;  %214 = vperm.xlu1 %741, %v84_v40   ;;  %v553_v39 = vsub.s32 3, %v991_v8 }
  0x39   :  { %199 = vperm.xlu0 %740, %v81_v41   ;;  %219 = vperm.xlu1 %741, %v85_v42  }
  0x3d   :  { %204 = vperm.xlu0 %740, %v82_v43   ;;  %224 = vperm.xlu1 %741, %v86_v44   ;;  %v542_v43 = vrot.slane %v30_v12, %v541_v27 }
  0x41   :  { %597 = vperm.xlu0 %740, %v591_v45   ;;  %602 = vperm.xlu1 %741, %v592_v46  }
  0x45   :  { %607 = vperm.xlu0 %740, %v593_v47   ;;  %612 = vperm.xlu1 %741, %v594_v48  }
  0x49   :  { %635 = vperm.xlu0 %740, %v632_v49  }
  0x84   :  { %v90_v50 = vpop.permute.xlu0 %89  ;;  %v100_v51 = vpop.permute.xlu1 %99 }
  0x88   :  { %v95_v52 = vpop.permute.xlu0 %94  ;;  %v110_v53 = vpop.permute.xlu1 %109 }
  0x8c   :  { %v115_v54 = vpop.permute.xlu0 %114  ;;  %v105_v55 = vpop.permute.xlu1 %104 }
  0x90   :  { %v120_v56 = vpop.permute.xlu0 %119  ;;  %v130_v57 = vpop.permute.xlu1 %129 }
  0x94   :  { %v982_v58 = vpop.permute.xlu0 %134  ;;  %v170_v59 = vpop.permute.xlu1 %169 }
  0x98   :  { %v984_v60 = vpop.permute.xlu0 %174  ;;  %v125_v63 = vpop.permute.xlu1 %124 }
  0x9c   :  { %v140_v1 = vpop.permute.xlu0 %139  ;;  %v989_v7 = vpop.permute.xlu1 %149 }
  0xa0   :  { %v993_v11 = vpop.permute.xlu0 %154  ;;  %v180_v21 = vpop.permute.xlu1 %179 }
  0xa4   :  { %v145_v28 = vpop.permute.xlu0 %144  ;;  %v160_v45 = vpop.permute.xlu1 %159 }
  0xc8   :  { %v710_v61 = vpop.f32.mrf.mxu0  ;;  %v726_v3 = vpop.f32.mrf.mxu1 }
  0xc9   :  { %v389_v13 = vadd.f32 %v710_v61, %v100_v51  ;;  %v453_v46 = vadd.f32 %v726_v3, %v180_v21  ;;  %v165_v21 = vpop.permute.xlu1 %164 }
  0xca   :  { %v380_v62 = vpop.f32.mrf.mxu0  ;;  %v444_v9 = vpop.f32.mrf.mxu1 }
  0xcb   :  { %v381_v16 = vadd.f32 %v380_v62, %v90_v50  ;;  %v493_v23 = vand.u32 2147483647, %v389_v13 }
  0xcc   :  { %v711_v0 = vpop.f32.mrf.mxu0  ;;  %v727_v17 = vpop.f32.mrf.mxu1 }
  0xcd   :  { %v392_v24 = vadd.f32 %v711_v0, %v105_v55  ;;  %v491_v29 = vand.u32 2147483647, %v381_v16  ;;  %v521_v36 = vmul.f32 %v518_v22, %v493_v23 }
  0xce   :  { %v383_v4 = vpop.f32.mrf.mxu0  ;;  %v447_v31 = vpop.f32.mrf.mxu1 }
  0xcf   :  { %v494_v37 = vand.u32 2147483647, %v392_v24  ;;  %v384_v40 = vadd.f32 %v383_v4, %v95_v52  ;;  %v519_v47 = vmul.f32 %v518_v22, %v491_v29  ;;  %v525_v61 = vadd.f32 %v521_v36, %v453_v46  ;;  %v185_v52 = vpop.permute.xlu0 %184 }
  0xd0   :  { %v714_v6 = vpop.f32.mrf.mxu0  ;;  %v1001_v50 = vpop.f32.mrf.mxu1 }
  0xd1   :  { %v405_v18 = vadd.f32 %v714_v6, %v120_v56  ;;  %v522_v62 = vmul.f32 %v518_v22, %v494_v37  ;;  %v492_v0 = vand.u32 2147483647, %v384_v40  ;;  %v456_v6 = vadd.f32 %v727_v17, %v185_v52 }
  0xd2   :  { %v396_v10 = vpop.f32.mrf.mxu0  ;;  %v1004_v16 = vpop.f32.mrf.mxu1 }
  0xd3   :  { %v397_v25 = vadd.f32 %v396_v10, %v110_v53  ;;  %v497_v32 = vand.u32 2147483647, %v405_v18  ;;  %v520_v23 = vmul.f32 %v518_v22, %v492_v0  ;;  %v190_v40 = vpop.permute.xlu0 %189 }
  0xd4   :  { %v715_v14 = vpop.f32.mrf.mxu0 }
  0xd5   :  { %v408_v34 = vadd.f32 %v715_v14, %v125_v63  ;;  %v495_v41 = vand.u32 2147483647, %v397_v25  ;;  %v533_v49 = vmul.f32 %v530_v33, %v497_v32  ;;  %v554_v63 = vrot.slane %v30_v12, %v553_v39 }
  0xd6   :  { %v399_v20 = vpop.f32.mrf.mxu0 }
  0xd7   :  { %v498_v51 = vand.u32 2147483647, %v408_v34  ;;  %v400_v53 = vadd.f32 %v399_v20, %v115_v54  ;;  %v537_v14 = vadd.f32 %v533_v49, %v525_v61  ;;  %v731_v34 = vpop.f32.mrf.mxu1 }
  0xd8   :  { %v718_v26 = vpop.f32.mrf.mxu0 }
  0xd9   :  { %v421_v30 = vadd.f32 %v718_v26, %v140_v1  ;;  %v531_v1 = vmul.f32 %v530_v33, %v495_v41  ;;  %v534_v54 = vmul.f32 %v530_v33, %v498_v51  ;;  %v496_v18 = vand.u32 2147483647, %v400_v53 }
  0xda   :  { %v412_v35 = vpop.f32.mrf.mxu0 }
  0xdb   :  { %v413_v38 = vadd.f32 %v412_v35, %v130_v57  ;;  %v501_v42 = vand.u32 2147483647, %v421_v30  ;;  %v445_v57 = vadd.f32 %v444_v9, %v170_v59  ;;  %v526_v9 = vadd.f32 %v522_v62, %v456_v6 }
  0xdc   :  { %v719_v44 = vpop.f32.mrf.mxu0  ;;  %v448_v30 = vadd.f32 %v447_v31, %v984_v60  ;;  %v532_v35 = vmul.f32 %v530_v33, %v496_v18  ;;  %v195_v60 = vpop.permute.xlu1 %194 }
  0xdd   :  { %v424_v48 = vadd.f32 %v719_v44, %v145_v28  ;;  %v499_v55 = vand.u32 2147483647, %v413_v38  ;;  %v545_v2 = vmul.f32 %v542_v43, %v501_v42  ;;  %v523_v5 = vadd.f32 %v519_v47, %v445_v57 }
  0xde   :  { %v415_v56 = vpop.f32.mrf.mxu0  ;;  %v538_v32 = vadd.f32 %v534_v54, %v526_v9  ;;  %v524_v41 = vadd.f32 %v520_v23, %v448_v30 }
  0xdf   :  { %v416_v4 = vadd.f32 %v415_v56, %v982_v58  ;;  %v502_v10 = vand.u32 2147483647, %v424_v48  ;;  %v543_v19 = vmul.f32 %v542_v43, %v499_v55  ;;  %v535_v24 = vadd.f32 %v531_v1, %v523_v5  ;;  %v463_v48 = vpop.f32.mrf.mxu1 }
  0xe0   :  { %v722_v3 = vpop.f32.mrf.mxu0  ;;  %v549_v58 = vadd.f32 %v545_v2, %v537_v14  ;;  %v536_v31 = vadd.f32 %v532_v35, %v524_v41  ;;  %v215_v0 = vpop.permute.xlu1 %214 }
  0xe1   :  { %v437_v13 = vadd.f32 %v722_v3, %v160_v45  ;;  %v500_v25 = vand.u32 2147483647, %v416_v4  ;;  %v546_v17 = vmul.f32 %v542_v43, %v502_v10  ;;  %v547_v36 = vadd.f32 %v543_v19, %v535_v24  ;;  %v734_v62 = vpop.f32.mrf.mxu1 }
  0xe2   :  { %v428_v59 = vpop.f32.mrf.mxu0  ;;  %v461_v19 = vadd.f32 %v1004_v16, %v190_v40 }
  0xe3   :  { %v505_v12 = vand.u32 2147483647, %v437_v13  ;;  %v429_v20 = vadd.f32 %v428_v59, %v989_v7  ;;  %v544_v42 = vmul.f32 %v542_v43, %v500_v25  ;;  %v550_v44 = vadd.f32 %v546_v17, %v538_v32  ;;  %v476_v2 = vpop.f32.mrf.mxu1 }
  0xe4   :  { %v723_v26 = vpop.f32.mrf.mxu0  ;;  %v220_v5 = vpop.permute.xlu1 %219 }
  0xe5   :  { %v557_v27 = vmul.f32 %v554_v63, %v505_v12  ;;  %v503_v28 = vand.u32 2147483647, %v429_v20  ;;  %v440_v29 = vadd.f32 %v723_v26, %v165_v21  ;;  %v548_v55 = vadd.f32 %v544_v42, %v536_v31  ;;  %v735_v6 = vpop.f32.mrf.mxu1 }
  0xe6   :  { %v431_v37 = vpop.f32.mrf.mxu0  ;;  %v464_v21 = vadd.f32 %v463_v48, %v195_v60  ;;  %v485_v24 = vadd.f32 %v734_v62, %v220_v5 }
  0xe7   :  { %v1008_v38 = vadd.f32 %v557_v27, %v549_v58  ;;  %v555_v7 = vmul.f32 %v554_v63, %v503_v28  ;;  %v506_v39 = vand.u32 2147483647, %v440_v29  ;;  %v432_v22 = vadd.f32 %v431_v37, %v993_v11  ;;  %v210_v11 = vpop.permute.xlu0 %209  ;;  %v479_v13 = vpop.f32.mrf.mxu1 }
  0xe8   :  { %v225_v54 = vpop.permute.xlu1 %224  ;;  %v477_v18 = vadd.f32 %v476_v2, %v210_v11  ;;  %v480_v59 = vadd.f32 %v479_v13, %v215_v0  ;;  %v507_v29 = vand.u32 2147483647, %v461_v19 }
  0xe9   :  { %v569_v45 = vmin.f32 %v1008_v38, 0.0  ;;  %v559_v46 = vadd.f32 %v555_v7, %v547_v36  ;;  %v558_v47 = vmul.f32 %v554_v63, %v506_v39  ;;  %v504_v33 = vand.u32 2147483647, %v432_v22 }
  0xea   :  { %v511_v26 = vmax.f32 %v477_v18, 0.0  ;;  %v488_v30 = vadd.f32 %v735_v6, %v225_v54  ;;  %v512_v32 = vmax.f32 %v480_v59, 0.0  ;;  %vm565_vm2 = vcmp.gt.f32.partialorder %v1008_v38, 0.0 }
  0xeb   :  { %v575_v49 = vmul.f32 1.442695, %v569_v45  ;;  %v567_v51 = vmin.f32 %v559_v46, 0.0  ;;  %v562_v53 = vadd.f32 %v558_v47, %v550_v44  ;;  %v556_v56 = vmul.f32 %v554_v63, %v504_v33  ;;  %v200_v3 = vpop.permute.xlu0 %199 }
  0xec   :  { %v469_v20 = vadd.f32 %v1001_v50, %v200_v3  ;;  %vm563_vm1 = vcmp.gt.f32.partialorder %v559_v46, 0.0  ;;  %v603_v16 = vpop.permute.xlu1 %602  ;;  %v508_v36 = vand.u32 2147483647, %v464_v21  ;;  %v513_v7 = vmax.f32 %v485_v24, 0.0 }
  0xed   :  { %v571_v61 = vmul.f32 1.442695, %v567_v51  ;;  %v570_v57 = vmin.f32 %v562_v53, 0.0  ;;  %757 = vpow2.f32 %v575_v49  ;;  %v560_v43 = vadd.f32 %v556_v56, %v548_v55 }
  0xee   :  { %v509_v35 = vand.u32 2147483647, %v469_v20  ;;  %vm566_vm3 = vcmp.gt.f32.partialorder %v562_v53, 0.0  ;;  %v514_v42 = vmax.f32 %v488_v30, 0.0  ;;  %v616_v44 = vmul.f32 %v603_v16, %v512_v32 }
  0xef   :  { %759 = vpow2.f32 %v571_v61  ;;  %v577_v52 = vmul.f32 1.442695, %v570_v57  ;;  %v568_v1 = vmin.f32 %v560_v43, 0.0  ;;  %v205_v10 = vpop.permute.xlu0 %204  ;;  %vm564_vm4 = vcmp.gt.f32.partialorder %v560_v43, 0.0 }
  0xf0   :  { %v472_v25 = vadd.f32 %v731_v34, %v205_v10  ;;  %v613_v49 = vpop.permute.xlu1 %612 }
  0xf1   :  { %761 = vpow2.f32 %v577_v52  ;;  %v573_v4 = vmul.f32 1.442695, %v568_v1 }
  0xf2   :  { %v510_v34 = vand.u32 2147483647, %v472_v25 }
  0xf3   :  { %763 = vpow2.f32 %v573_v4  ;;  %v598_v58 = vpop.permute.xlu0 %597 }
  0xf4   :  { %v615_v22 = vmul.f32 %v598_v58, %v511_v26 }
  0xf7   :  { %v608_v47 = vpop.permute.xlu0 %607 }
  0xf8   :  { %v617_v60 = vmul.f32 %v608_v47, %v513_v7 }
  0xfa   :  { %v758_v63 = vpop.eup %757 }
  0xfb   :  { %v689_v23 = vadd.f32 -1.0, %v758_v63  ;;  %v636_v52 = vpop.permute.xlu0 %635 }
  0xfc   :  { %v760_v14 = vpop.eup %759  ;;  %v641_v1 = vrot.slane %v636_v52, %v517_v15 }
  0xfd   :  { %v687_v9 = vadd.f32 -1.0, %v760_v14  ;;  %v585_v50 = vsel %vm565_vm2, %v1008_v38, %v689_v23  ;;  %v618_v38 = vmul.f32 %v613_v49, %v514_v42 }
  0xfe   :  { %v762_v12 = vpop.eup %761  ;;  %v589_v45 = vmul.f32 %v585_v50, %v509_v35 }
  0xff   :  { %v583_v17 = vsel %vm563_vm1, %v559_v46, %v687_v9  ;;  %v690_v27 = vadd.f32 -1.0, %v762_v12 }
 0x100   :  { %v764_v28 = vpop.eup %763  ;;  %v587_v39 = vmul.f32 %v583_v17, %v507_v29  ;;  %v621_v51 = vadd.f32 %v617_v60, %v589_v45 }
 0x101   :  { %v688_v37 = vadd.f32 -1.0, %v764_v28  ;;  %v586_v40 = vsel %vm566_vm3, %v562_v53, %v690_v27 }
 0x102   :  { %v619_v31 = vadd.f32 %v615_v22, %v587_v39  ;;  %v590_v48 = vmul.f32 %v586_v40, %v510_v34 }
 0x103   :  { %v584_v41 = vsel %vm564_vm4, %v560_v43, %v688_v37 }
 0x104   :  { %v588_v46 = vmul.f32 %v584_v41, %v508_v36  ;;  %v622_v56 = vadd.f32 %v618_v38, %v590_v48 }
 0x106   :  { %v620_v33 = vadd.f32 %v616_v44, %v588_v46 }
 0x108   :  { %v623_v55 = vadd.f32 %v620_v33, %v619_v31 }
 0x10a   :  { %v624_v61 = vadd.f32 %v623_v55, %v621_v51 }
 0x10c   :  { %v625_v57 = vadd.f32 %v624_v61, %v622_v56 }
 0x10e   :  { %v626_v11 = vrot.slane %v625_v57, 4 }
 0x110   :  { %v627_v62 = vadd.f32 %v626_v11, %v625_v57 }
 0x112   :  { %v628_v53 = vrot.slane %v627_v62, 2 }
 0x114   :  { %v629_v43 = vadd.f32 %v628_v53, %v627_v62 }
 0x116   :  { %v630_v0 = vrot.slane %v629_v43, 1 }
 0x118   :  { %v631_v2 = vadd.f32 %v630_v0, %v629_v43 }
 0x11a   :  { %v642_v4 = vadd.f32 %v641_v1, %v631_v2 }
 0x11c   :  { %643 = vst [vmem:[#allocation3] sm:$0x1] %v642_v4 }
 0x11d   :  { %776 = shalt.err (!%p773_p4)
}
 0x11e   :  { %653 = dma.vmem_to_hbm [thread:$0]  %s651_s11, 16, %s1027_s6, [#allocation4]  }
 0x11f   :  { %785 = dma.done.wait [#allocation4], 16  }
 0x120   :  { %786 = vsyncadd [#allocation4], 4294967280 }
 0x121   :  { %657 = vsyncpa [#allocation4], 1 }

</bundles_post_ra>
